<compile_context>
chip_gen: v6e
topology: v6e:2x2x1
jax: 0.10.0
libtpu: 0.0.40
codegen_flags: <defaults>
</compile_context>

<pallas_src>
import functools

import jax
import jax.numpy as jnp
from jax import lax
from jax.experimental import pallas as pl
from jax.experimental.pallas import tpu as pltpu

# ---- module hyper-params (mirrors the PyTorch script) ----
N_EMBD = 16          # n_embd
BLOCK_SIZE = 7       # block_size (max sequence length; we use T == block_size)
NUM_HEADS = 4
HEAD_SIZE = 4        # num_heads * head_size == n_embd


def _mha_kernel(x_ref, wqkv_ref, wproj_ref, bproj_ref, out_ref, attn_ref,
                *, B, T, C, H, hs):
    """Single invocation processes the whole batch.

    x_ref:     (B*T, C)        batch and time flattened into one row axis
    wqkv_ref:  (C, 3*H*hs)     packed [q heads | k heads | v heads]
    wproj_ref: (H*hs, C)
    bproj_ref: (1, C)
    out_ref:   (B*T, C)
    attn_ref:  (B, H, T, T)
    """
    scale = hs ** -0.5

    # causal mask: keep (i, j) iff j <= i  (tril[:T,:T] == 1)
    row = lax.broadcasted_iota(jnp.int32, (T, T), 0)
    col = lax.broadcasted_iota(jnp.int32, (T, T), 1)
    keep = col <= row

    # ONE fused QKV projection for the whole batch: (B*T, C) @ (C, 3*H*hs).
    qkv = jnp.dot(x_ref[...], wqkv_ref[...], preferred_element_type=jnp.float32)

    rows = []
    for b in range(B):            # B, H are tiny and static -> unrolled
        head_outs = []
        for h in range(H):
            q = qkv[b * T:(b + 1) * T, h * hs:(h + 1) * hs]                 # (T, hs)
            k = qkv[b * T:(b + 1) * T, (H + h) * hs:(H + h + 1) * hs]       # (T, hs)
            v = qkv[b * T:(b + 1) * T, (2 * H + h) * hs:(2 * H + h + 1) * hs]

            # scores = q @ k^T * hs^-0.5
            scores = lax.dot_general(q, k, (((1,), (1,)), ((), ())),
                                     preferred_element_type=jnp.float32) * scale
            # -1e30 (not -inf) is safe: the causal diagonal is always kept so no row
            # is ever fully masked. Use an additive mask if that ever changes.
            scores = jnp.where(keep, scores, -1e30)

            # numerically stable softmax; EXACT normalization (attn is a user-visible
            # output — the approximate reciprocal previously failed the check).
            m = jnp.max(scores, axis=-1, keepdims=True)
            e = jnp.exp(scores - m)
            denom = jnp.sum(e, axis=-1, keepdims=True)
            wei = e / denom                                                  # (T, T)

            # direct per-head store — no jnp.stack relayout
            attn_ref[b, h] = wei.astype(attn_ref.dtype)

            # TODO(synk): training-mode dropout (p=0.2) on the attention weights and on
            # the output projection is not implemented; eval-mode identity is assumed.
            head_outs.append(jnp.dot(wei, v, preferred_element_type=jnp.float32))

        rows.append(jnp.concatenate(head_outs, axis=-1))     # (T, H*hs) lane concat

    heads_all = jnp.concatenate(rows, axis=0)                 # (B*T, H*hs)

    # ONE output projection + ONE bias add + ONE store for the whole batch.
    out = jnp.dot(heads_all, wproj_ref[...], preferred_element_type=jnp.float32)
    out_ref[...] = (out + bproj_ref[...]).astype(out_ref.dtype)


def pack_qkv_weights(wq, wk, wv):
    """Pack per-head (H, C, hs) q/k/v weights into one (C, 3*H*hs) matrix.

    Call ONCE at parameter-init time (not per forward call): the transposes/concat are
    separate dispatched XLA ops that would otherwise cost as much as the kernel itself.
    """
    H, C, hs = wq.shape

    def _flat(w):   # (H, C, hs) -> (C, H*hs), column block h*hs:(h+1)*hs == w[h]
        return jnp.transpose(w, (1, 0, 2)).reshape(C, H * hs)

    return jnp.concatenate([_flat(wq), _flat(wk), _flat(wv)], axis=-1)


def multi_head_attention(x, wqkv, wproj, bproj,
                         *, num_heads=NUM_HEADS, head_size=HEAD_SIZE):
    """x: (B, T, C) f32; wqkv: (C, 3*H*hs) pre-packed.  Returns (out, attns)."""
    B, T, C = x.shape
    H, hs = num_heads, head_size
    assert wqkv.shape == (C, 3 * H * hs)

    kernel = functools.partial(_mha_kernel, B=B, T=T, C=C, H=H, hs=hs)

    out_shapes = (
        jax.ShapeDtypeStruct((B * T, C), jnp.float32),
        jax.ShapeDtypeStruct((B, H, T, T), jnp.float32),
    )

    vmem = pltpu.MemorySpace.VMEM
    # No grid: single kernel invocation, all operands resident in VMEM.
    # (Deliberately NOT split across v7x's two TensorCores — at this size the
    # cross-core sync would cost more than the ~1 µs of compute it could hide.)
    out_flat, attns = pl.pallas_call(
        kernel,
        out_shape=out_shapes,
        in_specs=[
            pl.BlockSpec(memory_space=vmem),   # x_flat   (B*T, C)
            pl.BlockSpec(memory_space=vmem),   # wqkv     (C, 3*H*hs)
            pl.BlockSpec(memory_space=vmem),   # wproj    (H*hs, C)
            pl.BlockSpec(memory_space=vmem),   # bproj    (1, C)
        ],
        out_specs=(
            pl.BlockSpec(memory_space=vmem),   # out      (B*T, C)
            pl.BlockSpec(memory_space=vmem),   # attns    (B, H, T, T)
        ),
    )(x.reshape(B * T, C), wqkv, wproj, bproj)

    return out_flat.reshape(B, T, C), attns


def _reference(x, wq, wk, wv, wproj, bproj):
    """Pure-JAX reference mirroring the PyTorch forward (eval mode)."""
    B, T, C = x.shape
    H, hs = wq.shape[0], wq.shape[2]
    outs, attns = [], []
    keep = jnp.tril(jnp.ones((T, T), dtype=bool))
    for h in range(H):
        q = x @ wq[h]
        k = x @ wk[h]
        v = x @ wv[h]
        wei = (q @ jnp.swapaxes(k, -2, -1)) * hs ** -0.5
        wei = jnp.where(keep, wei, -jnp.inf)
        wei = jax.nn.softmax(wei, axis=-1)
        attns.append(wei)
        outs.append(wei @ v)
    out = jnp.concatenate(outs, axis=-1) @ wproj + bproj[0]
    return out, jnp.stack(attns, axis=1)


if __name__ == "__main__":
    key = jax.random.PRNGKey(0)
    kx, k1, k2, k3, k4, k5 = jax.random.split(key, 6)

    B, T, C = 2, BLOCK_SIZE, N_EMBD            # (2, 7, 16)
    H, hs = NUM_HEADS, HEAD_SIZE

    x = jax.random.normal(kx, (B, T, C), dtype=jnp.float32)

    # deterministic parameter init (synthetic; mirrors nn.Linear shapes, pre-transposed)
    wq = jax.random.normal(k1, (H, C, hs), dtype=jnp.float32) * (1.0 / jnp.sqrt(C))
    wk = jax.random.normal(k2, (H, C, hs), dtype=jnp.float32) * (1.0 / jnp.sqrt(C))
    wv = jax.random.normal(k3, (H, C, hs), dtype=jnp.float32) * (1.0 / jnp.sqrt(C))
    wproj = jax.random.normal(k4, (H * hs, C), dtype=jnp.float32) * (1.0 / jnp.sqrt(H * hs))
    bproj = (jax.random.normal(k5, (1, C), dtype=jnp.float32) * 0.01).astype(jnp.float32)

    # one-time packing at parameter-init time (NOT in the per-call forward path)
    wqkv = pack_qkv_weights(wq, wk, wv)
    wqkv = jax.block_until_ready(wqkv)

    out, attns = multi_head_attention(x, wqkv, wproj, bproj)
    out = jax.block_until_ready(out)
    attns = jax.block_until_ready(attns)

    # same shape/semantic asserts as the PyTorch module
    assert attns.shape[0] == x.shape[0]
    assert attns.shape[1] == H
    assert attns.shape[2] == attns.shape[3] == x.shape[1]

    # exact-normalization sanity check: every attention row sums to 1
    row_sums = jnp.sum(attns, axis=-1)
    assert jnp.allclose(row_sums, jnp.ones_like(row_sums), atol=1e-3, rtol=1e-3)

    # correctness check against pure-JAX reference
    # (tolerance 2e-2 only absorbs MXU f32 pass-rounding differences between the Mosaic
    #  kernel and XLA's own dots on real hardware; a real bug would be off by O(1).)
    ref_out, ref_attns = _reference(x, wq, wk, wv, wproj, bproj)
    assert jnp.allclose(out, ref_out, atol=2e-2, rtol=2e-2)
    assert jnp.allclose(attns, ref_attns, atol=2e-2, rtol=2e-2)

    print("KERNEL_OK")
</pallas_src>

<mosaic_0001>
module attributes {stable_mosaic.version = 11 : i64} {
  func.func @_mha_kernel(%arg0: memref<14x16xf32, #tpu.memory_space<vmem>>, %arg1: memref<16x48xf32, #tpu.memory_space<vmem>>, %arg2: memref<16x16xf32, #tpu.memory_space<vmem>>, %arg3: memref<1x16xf32, #tpu.memory_space<vmem>>, %arg4: memref<14x16xf32, #tpu.memory_space<vmem>>, %arg5: memref<2x4x7x7xf32, #tpu.memory_space<vmem>>) attributes {dimension_semantics = [], scalar_prefetch = 0 : i64, scratch_operands = 0 : i64, tpu.core_type = #tpu.core_type<tc>} {
    %0 = tpu.iota {dimensions = array<i32: 0>} : vector<7x7xi32>
    %1 = tpu.iota {dimensions = array<i32: 1>} : vector<7x7xi32>
    %2 = arith.cmpi sle, %1, %0 : vector<7x7xi32>
    %c0 = arith.constant 0 : index
    %c0_0 = arith.constant 0 : index
    %3 = vector.load %arg0[%c0, %c0_0] : memref<14x16xf32, #tpu.memory_space<vmem>>, vector<14x16xf32>
    %c0_1 = arith.constant 0 : index
    %c0_2 = arith.constant 0 : index
    %4 = vector.load %arg1[%c0_1, %c0_2] : memref<16x48xf32, #tpu.memory_space<vmem>>, vector<16x48xf32>
    %cst = arith.constant dense<0.000000e+00> : vector<14x48xf32>
    %5 = tpu.matmul %3, %4, %cst {dimension_numbers = #tpu.dot_dimension_numbers<[1], [0], [0], [1], [0, 0, 1, 1], [], []>} : vector<14x16xf32>, vector<16x48xf32>, vector<14x48xf32> -> vector<14x48xf32>
    %6 = vector.extract_strided_slice %5 {offsets = [0, 0], sizes = [7, 4], strides = [1, 1]} : vector<14x48xf32> to vector<7x4xf32>
    %7 = vector.extract_strided_slice %5 {offsets = [0, 16], sizes = [7, 4], strides = [1, 1]} : vector<14x48xf32> to vector<7x4xf32>
    %8 = vector.extract_strided_slice %5 {offsets = [0, 32], sizes = [7, 4], strides = [1, 1]} : vector<14x48xf32> to vector<7x4xf32>
    %cst_3 = arith.constant dense<0.000000e+00> : vector<7x7xf32>
    %9 = tpu.matmul %6, %7, %cst_3 {dimension_numbers = #tpu.dot_dimension_numbers<[1], [1], [0], [0], [0, 0, 1, 0], [], []>} : vector<7x4xf32>, vector<7x4xf32>, vector<7x7xf32> -> vector<7x7xf32>
    %cst_4 = arith.constant 5.000000e-01 : f32
    %10 = vector.broadcast %cst_4 : f32 to vector<7x7xf32>
    %11 = arith.mulf %9, %10 : vector<7x7xf32>
    %cst_5 = arith.constant -1.000000e+30 : f32
    %12 = vector.broadcast %cst_5 : f32 to vector<7x7xf32>
    %13 = arith.select %2, %11, %12 : vector<7x7xi1>, vector<7x7xf32>
    %cst_6 = arith.constant dense<0xFF800000> : vector<7xf32>
    %14 = vector.multi_reduction <maximumf>, %13, %cst_6 [1] : vector<7x7xf32> to vector<7xf32>
    %15 = vector.shape_cast %14 : vector<7xf32> to vector<7x1xf32>
    %16 = vector.broadcast %15 : vector<7x1xf32> to vector<7x7xf32>
    %17 = arith.subf %13, %16 : vector<7x7xf32>
    %18 = math.exp %17 : vector<7x7xf32>
    %cst_7 = arith.constant dense<0.000000e+00> : vector<7xf32>
    %19 = vector.multi_reduction <add>, %18, %cst_7 [1] : vector<7x7xf32> to vector<7xf32>
    %20 = vector.shape_cast %19 : vector<7xf32> to vector<7x1xf32>
    %21 = vector.broadcast %20 : vector<7x1xf32> to vector<7x7xf32>
    %22 = arith.divf %18, %21 : vector<7x7xf32>
    %c0_8 = arith.constant 0 : index
    %c0_9 = arith.constant 0 : index
    %c0_10 = arith.constant 0 : index
    %c0_11 = arith.constant 0 : index
    %23 = vector.load %arg5[%c0_8, %c0_9, %c0_10, %c0_11] : memref<2x4x7x7xf32, #tpu.memory_space<vmem>>, vector<1x1x7x7xf32>
    %24 = vector.shape_cast %23 : vector<1x1x7x7xf32> to vector<7x7xf32>
    %25 = vector.shape_cast %22 : vector<7x7xf32> to vector<1x1x7x7xf32>
    tpu.vector_store %arg5[%c0_8, %c0_9, %c0_10, %c0_11], %25 {strides = array<i32>} : memref<2x4x7x7xf32, #tpu.memory_space<vmem>>, vector<1x1x7x7xf32>,
    %cst_12 = arith.constant dense<0.000000e+00> : vector<7x4xf32>
    %26 = tpu.matmul %22, %8, %cst_12 {dimension_numbers = #tpu.dot_dimension_numbers<[1], [0], [0], [1], [0, 0, 1, 1], [], []>} : vector<7x7xf32>, vector<7x4xf32>, vector<7x4xf32> -> vector<7x4xf32>
    %27 = vector.extract_strided_slice %5 {offsets = [0, 4], sizes = [7, 4], strides = [1, 1]} : vector<14x48xf32> to vector<7x4xf32>
    %28 = vector.extract_strided_slice %5 {offsets = [0, 20], sizes = [7, 4], strides = [1, 1]} : vector<14x48xf32> to vector<7x4xf32>
    %29 = vector.extract_strided_slice %5 {offsets = [0, 36], sizes = [7, 4], strides = [1, 1]} : vector<14x48xf32> to vector<7x4xf32>
    %cst_13 = arith.constant dense<0.000000e+00> : vector<7x7xf32>
    %30 = tpu.matmul %27, %28, %cst_13 {dimension_numbers = #tpu.dot_dimension_numbers<[1], [1], [0], [0], [0, 0, 1, 0], [], []>} : vector<7x4xf32>, vector<7x4xf32>, vector<7x7xf32> -> vector<7x7xf32>
    %cst_14 = arith.constant 5.000000e-01 : f32
    %31 = vector.broadcast %cst_14 : f32 to vector<7x7xf32>
    %32 = arith.mulf %30, %31 : vector<7x7xf32>
    %cst_15 = arith.constant -1.000000e+30 : f32
    %33 = vector.broadcast %cst_15 : f32 to vector<7x7xf32>
    %34 = arith.select %2, %32, %33 : vector<7x7xi1>, vector<7x7xf32>
    %cst_16 = arith.constant dense<0xFF800000> : vector<7xf32>
    %35 = vector.multi_reduction <maximumf>, %34, %cst_16 [1] : vector<7x7xf32> to vector<7xf32>
    %36 = vector.shape_cast %35 : vector<7xf32> to vector<7x1xf32>
    %37 = vector.broadcast %36 : vector<7x1xf32> to vector<7x7xf32>
    %38 = arith.subf %34, %37 : vector<7x7xf32>
    %39 = math.exp %38 : vector<7x7xf32>
    %cst_17 = arith.constant dense<0.000000e+00> : vector<7xf32>
    %40 = vector.multi_reduction <add>, %39, %cst_17 [1] : vector<7x7xf32> to vector<7xf32>
    %41 = vector.shape_cast %40 : vector<7xf32> to vector<7x1xf32>
    %42 = vector.broadcast %41 : vector<7x1xf32> to vector<7x7xf32>
    %43 = arith.divf %39, %42 : vector<7x7xf32>
    %c0_18 = arith.constant 0 : index
    %c1 = arith.constant 1 : index
    %c0_19 = arith.constant 0 : index
    %c0_20 = arith.constant 0 : index
    %44 = vector.load %arg5[%c0_18, %c1, %c0_19, %c0_20] : memref<2x4x7x7xf32, #tpu.memory_space<vmem>>, vector<1x1x7x7xf32>
    %45 = vector.shape_cast %44 : vector<1x1x7x7xf32> to vector<7x7xf32>
    %46 = vector.shape_cast %43 : vector<7x7xf32> to vector<1x1x7x7xf32>
    tpu.vector_store %arg5[%c0_18, %c1, %c0_19, %c0_20], %46 {strides = array<i32>} : memref<2x4x7x7xf32, #tpu.memory_space<vmem>>, vector<1x1x7x7xf32>,
    %cst_21 = arith.constant dense<0.000000e+00> : vector<7x4xf32>
    %47 = tpu.matmul %43, %29, %cst_21 {dimension_numbers = #tpu.dot_dimension_numbers<[1], [0], [0], [1], [0, 0, 1, 1], [], []>} : vector<7x7xf32>, vector<7x4xf32>, vector<7x4xf32> -> vector<7x4xf32>
    %48 = vector.extract_strided_slice %5 {offsets = [0, 8], sizes = [7, 4], strides = [1, 1]} : vector<14x48xf32> to vector<7x4xf32>
    %49 = vector.extract_strided_slice %5 {offsets = [0, 24], sizes = [7, 4], strides = [1, 1]} : vector<14x48xf32> to vector<7x4xf32>
    %50 = vector.extract_strided_slice %5 {offsets = [0, 40], sizes = [7, 4], strides = [1, 1]} : vector<14x48xf32> to vector<7x4xf32>
    %cst_22 = arith.constant dense<0.000000e+00> : vector<7x7xf32>
    %51 = tpu.matmul %48, %49, %cst_22 {dimension_numbers = #tpu.dot_dimension_numbers<[1], [1], [0], [0], [0, 0, 1, 0], [], []>} : vector<7x4xf32>, vector<7x4xf32>, vector<7x7xf32> -> vector<7x7xf32>
    %cst_23 = arith.constant 5.000000e-01 : f32
    %52 = vector.broadcast %cst_23 : f32 to vector<7x7xf32>
    %53 = arith.mulf %51, %52 : vector<7x7xf32>
    %cst_24 = arith.constant -1.000000e+30 : f32
    %54 = vector.broadcast %cst_24 : f32 to vector<7x7xf32>
    %55 = arith.select %2, %53, %54 : vector<7x7xi1>, vector<7x7xf32>
    %cst_25 = arith.constant dense<0xFF800000> : vector<7xf32>
    %56 = vector.multi_reduction <maximumf>, %55, %cst_25 [1] : vector<7x7xf32> to vector<7xf32>
    %57 = vector.shape_cast %56 : vector<7xf32> to vector<7x1xf32>
    %58 = vector.broadcast %57 : vector<7x1xf32> to vector<7x7xf32>
    %59 = arith.subf %55, %58 : vector<7x7xf32>
    %60 = math.exp %59 : vector<7x7xf32>
    %cst_26 = arith.constant dense<0.000000e+00> : vector<7xf32>
    %61 = vector.multi_reduction <add>, %60, %cst_26 [1] : vector<7x7xf32> to vector<7xf32>
    %62 = vector.shape_cast %61 : vector<7xf32> to vector<7x1xf32>
    %63 = vector.broadcast %62 : vector<7x1xf32> to vector<7x7xf32>
    %64 = arith.divf %60, %63 : vector<7x7xf32>
    %c0_27 = arith.constant 0 : index
    %c2 = arith.constant 2 : index
    %c0_28 = arith.constant 0 : index
    %c0_29 = arith.constant 0 : index
    %65 = vector.load %arg5[%c0_27, %c2, %c0_28, %c0_29] : memref<2x4x7x7xf32, #tpu.memory_space<vmem>>, vector<1x1x7x7xf32>
    %66 = vector.shape_cast %65 : vector<1x1x7x7xf32> to vector<7x7xf32>
    %67 = vector.shape_cast %64 : vector<7x7xf32> to vector<1x1x7x7xf32>
    tpu.vector_store %arg5[%c0_27, %c2, %c0_28, %c0_29], %67 {strides = array<i32>} : memref<2x4x7x7xf32, #tpu.memory_space<vmem>>, vector<1x1x7x7xf32>,
    %cst_30 = arith.constant dense<0.000000e+00> : vector<7x4xf32>
    %68 = tpu.matmul %64, %50, %cst_30 {dimension_numbers = #tpu.dot_dimension_numbers<[1], [0], [0], [1], [0, 0, 1, 1], [], []>} : vector<7x7xf32>, vector<7x4xf32>, vector<7x4xf32> -> vector<7x4xf32>
    %69 = vector.extract_strided_slice %5 {offsets = [0, 12], sizes = [7, 4], strides = [1, 1]} : vector<14x48xf32> to vector<7x4xf32>
    %70 = vector.extract_strided_slice %5 {offsets = [0, 28], sizes = [7, 4], strides = [1, 1]} : vector<14x48xf32> to vector<7x4xf32>
    %71 = vector.extract_strided_slice %5 {offsets = [0, 44], sizes = [7, 4], strides = [1, 1]} : vector<14x48xf32> to vector<7x4xf32>
    %cst_31 = arith.constant dense<0.000000e+00> : vector<7x7xf32>
    %72 = tpu.matmul %69, %70, %cst_31 {dimension_numbers = #tpu.dot_dimension_numbers<[1], [1], [0], [0], [0, 0, 1, 0], [], []>} : vector<7x4xf32>, vector<7x4xf32>, vector<7x7xf32> -> vector<7x7xf32>
    %cst_32 = arith.constant 5.000000e-01 : f32
    %73 = vector.broadcast %cst_32 : f32 to vector<7x7xf32>
    %74 = arith.mulf %72, %73 : vector<7x7xf32>
    %cst_33 = arith.constant -1.000000e+30 : f32
    %75 = vector.broadcast %cst_33 : f32 to vector<7x7xf32>
    %76 = arith.select %2, %74, %75 : vector<7x7xi1>, vector<7x7xf32>
    %cst_34 = arith.constant dense<0xFF800000> : vector<7xf32>
    %77 = vector.multi_reduction <maximumf>, %76, %cst_34 [1] : vector<7x7xf32> to vector<7xf32>
    %78 = vector.shape_cast %77 : vector<7xf32> to vector<7x1xf32>
    %79 = vector.broadcast %78 : vector<7x1xf32> to vector<7x7xf32>
    %80 = arith.subf %76, %79 : vector<7x7xf32>
    %81 = math.exp %80 : vector<7x7xf32>
    %cst_35 = arith.constant dense<0.000000e+00> : vector<7xf32>
    %82 = vector.multi_reduction <add>, %81, %cst_35 [1] : vector<7x7xf32> to vector<7xf32>
    %83 = vector.shape_cast %82 : vector<7xf32> to vector<7x1xf32>
    %84 = vector.broadcast %83 : vector<7x1xf32> to vector<7x7xf32>
    %85 = arith.divf %81, %84 : vector<7x7xf32>
    %c0_36 = arith.constant 0 : index
    %c3 = arith.constant 3 : index
    %c0_37 = arith.constant 0 : index
    %c0_38 = arith.constant 0 : index
    %86 = vector.load %arg5[%c0_36, %c3, %c0_37, %c0_38] : memref<2x4x7x7xf32, #tpu.memory_space<vmem>>, vector<1x1x7x7xf32>
    %87 = vector.shape_cast %86 : vector<1x1x7x7xf32> to vector<7x7xf32>
    %88 = vector.shape_cast %85 : vector<7x7xf32> to vector<1x1x7x7xf32>
    tpu.vector_store %arg5[%c0_36, %c3, %c0_37, %c0_38], %88 {strides = array<i32>} : memref<2x4x7x7xf32, #tpu.memory_space<vmem>>, vector<1x1x7x7xf32>,
    %cst_39 = arith.constant dense<0.000000e+00> : vector<7x4xf32>
    %89 = tpu.matmul %85, %71, %cst_39 {dimension_numbers = #tpu.dot_dimension_numbers<[1], [0], [0], [1], [0, 0, 1, 1], [], []>} : vector<7x7xf32>, vector<7x4xf32>, vector<7x4xf32> -> vector<7x4xf32>
    %90 = tpu.concatenate %26, %47, %68, %89 in 1 : vector<7x4xf32>, vector<7x4xf32>, vector<7x4xf32>, vector<7x4xf32> -> vector<7x16xf32>
    %91 = vector.extract_strided_slice %5 {offsets = [7, 0], sizes = [7, 4], strides = [1, 1]} : vector<14x48xf32> to vector<7x4xf32>
    %92 = vector.extract_strided_slice %5 {offsets = [7, 16], sizes = [7, 4], strides = [1, 1]} : vector<14x48xf32> to vector<7x4xf32>
    %93 = vector.extract_strided_slice %5 {offsets = [7, 32], sizes = [7, 4], strides = [1, 1]} : vector<14x48xf32> to vector<7x4xf32>
    %cst_40 = arith.constant dense<0.000000e+00> : vector<7x7xf32>
    %94 = tpu.matmul %91, %92, %cst_40 {dimension_numbers = #tpu.dot_dimension_numbers<[1], [1], [0], [0], [0, 0, 1, 0], [], []>} : vector<7x4xf32>, vector<7x4xf32>, vector<7x7xf32> -> vector<7x7xf32>
    %cst_41 = arith.constant 5.000000e-01 : f32
    %95 = vector.broadcast %cst_41 : f32 to vector<7x7xf32>
    %96 = arith.mulf %94, %95 : vector<7x7xf32>
    %cst_42 = arith.constant -1.000000e+30 : f32
    %97 = vector.broadcast %cst_42 : f32 to vector<7x7xf32>
    %98 = arith.select %2, %96, %97 : vector<7x7xi1>, vector<7x7xf32>
    %cst_43 = arith.constant dense<0xFF800000> : vector<7xf32>
    %99 = vector.multi_reduction <maximumf>, %98, %cst_43 [1] : vector<7x7xf32> to vector<7xf32>
    %100 = vector.shape_cast %99 : vector<7xf32> to vector<7x1xf32>
    %101 = vector.broadcast %100 : vector<7x1xf32> to vector<7x7xf32>
    %102 = arith.subf %98, %101 : vector<7x7xf32>
    %103 = math.exp %102 : vector<7x7xf32>
    %cst_44 = arith.constant dense<0.000000e+00> : vector<7xf32>
    %104 = vector.multi_reduction <add>, %103, %cst_44 [1] : vector<7x7xf32> to vector<7xf32>
    %105 = vector.shape_cast %104 : vector<7xf32> to vector<7x1xf32>
    %106 = vector.broadcast %105 : vector<7x1xf32> to vector<7x7xf32>
    %107 = arith.divf %103, %106 : vector<7x7xf32>
    %c1_45 = arith.constant 1 : index
    %c0_46 = arith.constant 0 : index
    %c0_47 = arith.constant 0 : index
    %c0_48 = arith.constant 0 : index
    %108 = vector.load %arg5[%c1_45, %c0_46, %c0_47, %c0_48] : memref<2x4x7x7xf32, #tpu.memory_space<vmem>>, vector<1x1x7x7xf32>
    %109 = vector.shape_cast %108 : vector<1x1x7x7xf32> to vector<7x7xf32>
    %110 = vector.shape_cast %107 : vector<7x7xf32> to vector<1x1x7x7xf32>
    tpu.vector_store %arg5[%c1_45, %c0_46, %c0_47, %c0_48], %110 {strides = array<i32>} : memref<2x4x7x7xf32, #tpu.memory_space<vmem>>, vector<1x1x7x7xf32>,
    %cst_49 = arith.constant dense<0.000000e+00> : vector<7x4xf32>
    %111 = tpu.matmul %107, %93, %cst_49 {dimension_numbers = #tpu.dot_dimension_numbers<[1], [0], [0], [1], [0, 0, 1, 1], [], []>} : vector<7x7xf32>, vector<7x4xf32>, vector<7x4xf32> -> vector<7x4xf32>
    %112 = vector.extract_strided_slice %5 {offsets = [7, 4], sizes = [7, 4], strides = [1, 1]} : vector<14x48xf32> to vector<7x4xf32>
    %113 = vector.extract_strided_slice %5 {offsets = [7, 20], sizes = [7, 4], strides = [1, 1]} : vector<14x48xf32> to vector<7x4xf32>
    %114 = vector.extract_strided_slice %5 {offsets = [7, 36], sizes = [7, 4], strides = [1, 1]} : vector<14x48xf32> to vector<7x4xf32>
    %cst_50 = arith.constant dense<0.000000e+00> : vector<7x7xf32>
    %115 = tpu.matmul %112, %113, %cst_50 {dimension_numbers = #tpu.dot_dimension_numbers<[1], [1], [0], [0], [0, 0, 1, 0], [], []>} : vector<7x4xf32>, vector<7x4xf32>, vector<7x7xf32> -> vector<7x7xf32>
    %cst_51 = arith.constant 5.000000e-01 : f32
    %116 = vector.broadcast %cst_51 : f32 to vector<7x7xf32>
    %117 = arith.mulf %115, %116 : vector<7x7xf32>
    %cst_52 = arith.constant -1.000000e+30 : f32
    %118 = vector.broadcast %cst_52 : f32 to vector<7x7xf32>
    %119 = arith.select %2, %117, %118 : vector<7x7xi1>, vector<7x7xf32>
    %cst_53 = arith.constant dense<0xFF800000> : vector<7xf32>
    %120 = vector.multi_reduction <maximumf>, %119, %cst_53 [1] : vector<7x7xf32> to vector<7xf32>
    %121 = vector.shape_cast %120 : vector<7xf32> to vector<7x1xf32>
    %122 = vector.broadcast %121 : vector<7x1xf32> to vector<7x7xf32>
    %123 = arith.subf %119, %122 : vector<7x7xf32>
    %124 = math.exp %123 : vector<7x7xf32>
    %cst_54 = arith.constant dense<0.000000e+00> : vector<7xf32>
    %125 = vector.multi_reduction <add>, %124, %cst_54 [1] : vector<7x7xf32> to vector<7xf32>
    %126 = vector.shape_cast %125 : vector<7xf32> to vector<7x1xf32>
    %127 = vector.broadcast %126 : vector<7x1xf32> to vector<7x7xf32>
    %128 = arith.divf %124, %127 : vector<7x7xf32>
    %c1_55 = arith.constant 1 : index
    %c1_56 = arith.constant 1 : index
    %c0_57 = arith.constant 0 : index
    %c0_58 = arith.constant 0 : index
    %129 = vector.load %arg5[%c1_55, %c1_56, %c0_57, %c0_58] : memref<2x4x7x7xf32, #tpu.memory_space<vmem>>, vector<1x1x7x7xf32>
    %130 = vector.shape_cast %129 : vector<1x1x7x7xf32> to vector<7x7xf32>
    %131 = vector.shape_cast %128 : vector<7x7xf32> to vector<1x1x7x7xf32>
    tpu.vector_store %arg5[%c1_55, %c1_56, %c0_57, %c0_58], %131 {strides = array<i32>} : memref<2x4x7x7xf32, #tpu.memory_space<vmem>>, vector<1x1x7x7xf32>,
    %cst_59 = arith.constant dense<0.000000e+00> : vector<7x4xf32>
    %132 = tpu.matmul %128, %114, %cst_59 {dimension_numbers = #tpu.dot_dimension_numbers<[1], [0], [0], [1], [0, 0, 1, 1], [], []>} : vector<7x7xf32>, vector<7x4xf32>, vector<7x4xf32> -> vector<7x4xf32>
    %133 = vector.extract_strided_slice %5 {offsets = [7, 8], sizes = [7, 4], strides = [1, 1]} : vector<14x48xf32> to vector<7x4xf32>
    %134 = vector.extract_strided_slice %5 {offsets = [7, 24], sizes = [7, 4], strides = [1, 1]} : vector<14x48xf32> to vector<7x4xf32>
    %135 = vector.extract_strided_slice %5 {offsets = [7, 40], sizes = [7, 4], strides = [1, 1]} : vector<14x48xf32> to vector<7x4xf32>
    %cst_60 = arith.constant dense<0.000000e+00> : vector<7x7xf32>
    %136 = tpu.matmul %133, %134, %cst_60 {dimension_numbers = #tpu.dot_dimension_numbers<[1], [1], [0], [0], [0, 0, 1, 0], [], []>} : vector<7x4xf32>, vector<7x4xf32>, vector<7x7xf32> -> vector<7x7xf32>
    %cst_61 = arith.constant 5.000000e-01 : f32
    %137 = vector.broadcast %cst_61 : f32 to vector<7x7xf32>
    %138 = arith.mulf %136, %137 : vector<7x7xf32>
    %cst_62 = arith.constant -1.000000e+30 : f32
    %139 = vector.broadcast %cst_62 : f32 to vector<7x7xf32>
    %140 = arith.select %2, %138, %139 : vector<7x7xi1>, vector<7x7xf32>
    %cst_63 = arith.constant dense<0xFF800000> : vector<7xf32>
    %141 = vector.multi_reduction <maximumf>, %140, %cst_63 [1] : vector<7x7xf32> to vector<7xf32>
    %142 = vector.shape_cast %141 : vector<7xf32> to vector<7x1xf32>
    %143 = vector.broadcast %142 : vector<7x1xf32> to vector<7x7xf32>
    %144 = arith.subf %140, %143 : vector<7x7xf32>
    %145 = math.exp %144 : vector<7x7xf32>
    %cst_64 = arith.constant dense<0.000000e+00> : vector<7xf32>
    %146 = vector.multi_reduction <add>, %145, %cst_64 [1] : vector<7x7xf32> to vector<7xf32>
    %147 = vector.shape_cast %146 : vector<7xf32> to vector<7x1xf32>
    %148 = vector.broadcast %147 : vector<7x1xf32> to vector<7x7xf32>
    %149 = arith.divf %145, %148 : vector<7x7xf32>
    %c1_65 = arith.constant 1 : index
    %c2_66 = arith.constant 2 : index
    %c0_67 = arith.constant 0 : index
    %c0_68 = arith.constant 0 : index
    %150 = vector.load %arg5[%c1_65, %c2_66, %c0_67, %c0_68] : memref<2x4x7x7xf32, #tpu.memory_space<vmem>>, vector<1x1x7x7xf32>
    %151 = vector.shape_cast %150 : vector<1x1x7x7xf32> to vector<7x7xf32>
    %152 = vector.shape_cast %149 : vector<7x7xf32> to vector<1x1x7x7xf32>
    tpu.vector_store %arg5[%c1_65, %c2_66, %c0_67, %c0_68], %152 {strides = array<i32>} : memref<2x4x7x7xf32, #tpu.memory_space<vmem>>, vector<1x1x7x7xf32>,
    %cst_69 = arith.constant dense<0.000000e+00> : vector<7x4xf32>
    %153 = tpu.matmul %149, %135, %cst_69 {dimension_numbers = #tpu.dot_dimension_numbers<[1], [0], [0], [1], [0, 0, 1, 1], [], []>} : vector<7x7xf32>, vector<7x4xf32>, vector<7x4xf32> -> vector<7x4xf32>
    %154 = vector.extract_strided_slice %5 {offsets = [7, 12], sizes = [7, 4], strides = [1, 1]} : vector<14x48xf32> to vector<7x4xf32>
    %155 = vector.extract_strided_slice %5 {offsets = [7, 28], sizes = [7, 4], strides = [1, 1]} : vector<14x48xf32> to vector<7x4xf32>
    %156 = vector.extract_strided_slice %5 {offsets = [7, 44], sizes = [7, 4], strides = [1, 1]} : vector<14x48xf32> to vector<7x4xf32>
    %cst_70 = arith.constant dense<0.000000e+00> : vector<7x7xf32>
    %157 = tpu.matmul %154, %155, %cst_70 {dimension_numbers = #tpu.dot_dimension_numbers<[1], [1], [0], [0], [0, 0, 1, 0], [], []>} : vector<7x4xf32>, vector<7x4xf32>, vector<7x7xf32> -> vector<7x7xf32>
    %cst_71 = arith.constant 5.000000e-01 : f32
    %158 = vector.broadcast %cst_71 : f32 to vector<7x7xf32>
    %159 = arith.mulf %157, %158 : vector<7x7xf32>
    %cst_72 = arith.constant -1.000000e+30 : f32
    %160 = vector.broadcast %cst_72 : f32 to vector<7x7xf32>
    %161 = arith.select %2, %159, %160 : vector<7x7xi1>, vector<7x7xf32>
    %cst_73 = arith.constant dense<0xFF800000> : vector<7xf32>
    %162 = vector.multi_reduction <maximumf>, %161, %cst_73 [1] : vector<7x7xf32> to vector<7xf32>
    %163 = vector.shape_cast %162 : vector<7xf32> to vector<7x1xf32>
    %164 = vector.broadcast %163 : vector<7x1xf32> to vector<7x7xf32>
    %165 = arith.subf %161, %164 : vector<7x7xf32>
    %166 = math.exp %165 : vector<7x7xf32>
    %cst_74 = arith.constant dense<0.000000e+00> : vector<7xf32>
    %167 = vector.multi_reduction <add>, %166, %cst_74 [1] : vector<7x7xf32> to vector<7xf32>
    %168 = vector.shape_cast %167 : vector<7xf32> to vector<7x1xf32>
    %169 = vector.broadcast %168 : vector<7x1xf32> to vector<7x7xf32>
    %170 = arith.divf %166, %169 : vector<7x7xf32>
    %c1_75 = arith.constant 1 : index
    %c3_76 = arith.constant 3 : index
    %c0_77 = arith.constant 0 : index
    %c0_78 = arith.constant 0 : index
    %171 = vector.load %arg5[%c1_75, %c3_76, %c0_77, %c0_78] : memref<2x4x7x7xf32, #tpu.memory_space<vmem>>, vector<1x1x7x7xf32>
    %172 = vector.shape_cast %171 : vector<1x1x7x7xf32> to vector<7x7xf32>
    %173 = vector.shape_cast %170 : vector<7x7xf32> to vector<1x1x7x7xf32>
    tpu.vector_store %arg5[%c1_75, %c3_76, %c0_77, %c0_78], %173 {strides = array<i32>} : memref<2x4x7x7xf32, #tpu.memory_space<vmem>>, vector<1x1x7x7xf32>,
    %cst_79 = arith.constant dense<0.000000e+00> : vector<7x4xf32>
    %174 = tpu.matmul %170, %156, %cst_79 {dimension_numbers = #tpu.dot_dimension_numbers<[1], [0], [0], [1], [0, 0, 1, 1], [], []>} : vector<7x7xf32>, vector<7x4xf32>, vector<7x4xf32> -> vector<7x4xf32>
    %175 = tpu.concatenate %111, %132, %153, %174 in 1 : vector<7x4xf32>, vector<7x4xf32>, vector<7x4xf32>, vector<7x4xf32> -> vector<7x16xf32>
    %176 = tpu.concatenate %90, %175 in 0 : vector<7x16xf32>, vector<7x16xf32> -> vector<14x16xf32>
    %c0_80 = arith.constant 0 : index
    %c0_81 = arith.constant 0 : index
    %177 = vector.load %arg2[%c0_80, %c0_81] : memref<16x16xf32, #tpu.memory_space<vmem>>, vector<16x16xf32>
    %cst_82 = arith.constant dense<0.000000e+00> : vector<14x16xf32>
    %178 = tpu.matmul %176, %177, %cst_82 {dimension_numbers = #tpu.dot_dimension_numbers<[1], [0], [0], [1], [0, 0, 1, 1], [], []>} : vector<14x16xf32>, vector<16x16xf32>, vector<14x16xf32> -> vector<14x16xf32>
    %c0_83 = arith.constant 0 : index
    %c0_84 = arith.constant 0 : index
    %179 = vector.load %arg3[%c0_83, %c0_84] : memref<1x16xf32, #tpu.memory_space<vmem>>, vector<1x16xf32>
    %180 = vector.broadcast %179 : vector<1x16xf32> to vector<14x16xf32>
    %181 = arith.addf %178, %180 : vector<14x16xf32>
    %c0_85 = arith.constant 0 : index
    %c0_86 = arith.constant 0 : index
    %182 = vector.load %arg4[%c0_85, %c0_86] : memref<14x16xf32, #tpu.memory_space<vmem>>, vector<14x16xf32>
    tpu.vector_store %arg4[%c0_85, %c0_86], %181 {strides = array<i32>} : memref<14x16xf32, #tpu.memory_space<vmem>>, vector<14x16xf32>,
    return
  }
}

</mosaic_0001>

<bundles_post_ra>
// kernel: tpu_custom_call.1
= control target key start
LH: loop header
LB: loop body
LE: loop exit
PB: predicated region body
PF: predicated region fallthrough
CT: control target
= control target key end

     0   :  { %11 = vsyncpa [#allocation3], 0  ;;  %s2284_s0 = inlined_call_operand.hbm [shape: f32[14,16], index: 0, kind: input, shape index: {}]   ;;  %s2285_s1 = inlined_call_operand.hbm [shape: f32[16,48], index: 1, kind: input, shape index: {}]   ;;  %s2286_s2 = inlined_call_operand.hbm [shape: f32[16,16], index: 2, kind: input, shape index: {}]   ;;  %s2287_s3 = inlined_call_operand.vmem [shape: f32[1,16], index: 3, kind: input, shape index: {}]   ;;  %s2288_s4 = inlined_call_operand.hbm [shape: f32[14,16], index: 4, kind: output, shape index: {0}]   ;;  %s2289_s5 = inlined_call_operand.vmem [shape: f32[2,4,7,7], index: 5, kind: output, shape index: {1}]  }
   0x1   :  { %12 = vsyncpa [#allocation6], 0 }
   0x2   :  { %13 = vsyncpa [#allocation4], 0  ;;  %s1984_s18 = smov [#allocation5]   ;;  %s1985_s20 = smov [#allocation2]  }
   0x3   :  { %s31_s19 = sshll.u32 %s1984_s18, 4  ;;  %s19_s21 = sshll.u32 %s1985_s20, 4  ;;  %s32_s19 = int_to_ptr.vmem [resolvable:$true] %s31_s19  ;;  %s20_s21 = int_to_ptr.vmem [resolvable:$true] %s19_s21 }
   0x4   :  { %s1906_s22 = scalar_lea.vmem %s32_s19, 256  ;;  %p1911_p1 = scmp.lt.s32.totalorder %s32_s19, %s32_s19 }
   0x5   :  { %p1907_p0 = scmp.ne.s32.totalorder %s32_s19, %s1906_s22  ;;  %p1912_p2 = scmp.lt.s32.totalorder %s1906_s22, %s1906_s22 }
   0x7   :  { %p1913_p3 = por %p1912_p2, %p1911_p1 }
   0x9   :  { %p1914_p4 = pnand %p1913_p3, %p1907_p0 }
   0xb   :  { %1917 = shalt.err (!%p1914_p4)
}
   0xc   :  { %s1986_s23 = smov 128   ;;  %s1987_s24 = smov 8  }
   0xd   :  { %37 = dma.hbm_to_vmem [thread:$0]  %s2285_s1, 256, %s32_s19, [#allocation6], %s1986_s23, %s1986_s23, %s1987_s24  }
   0xe   :  { %s1926_s27 = scalar_lea.vmem %s20_s21, 256  ;;  %p1931_p6 = scmp.lt.s32.totalorder %s20_s21, %s20_s21 }
   0xf   :  { %p1927_p5 = scmp.ne.s32.totalorder %s20_s21, %s1926_s27  ;;  %p1932_p7 = scmp.lt.s32.totalorder %s1926_s27, %s1926_s27 }
  0x11   :  { %p1933_p8 = por %p1932_p7, %p1931_p6 }
  0x13   :  { %p1934_p9 = pnand %p1933_p8, %p1927_p5 }
  0x15   :  { %1937 = shalt.err (!%p1934_p9)
}
  0x16   :  { %25 = dma.hbm_to_vmem [thread:$0]  %s2284_s0, 256, %s20_s21, [#allocation3], %s1986_s23, %s1986_s23, %s1987_s24  }
  0x17   :  { %s1988_s30 = smov [#allocation7]  }
  0x18   :  { %s43_s6 = sshll.u32 %s1988_s30, 4  ;;  %s44_s6 = int_to_ptr.vmem [resolvable:$true] %s43_s6 }
  0x19   :  { %s1946_s7 = scalar_lea.vmem %s44_s6, 256  ;;  %p1951_p11 = scmp.lt.s32.totalorder %s44_s6, %s44_s6 }
  0x1a   :  { %p1947_p10 = scmp.ne.s32.totalorder %s44_s6, %s1946_s7  ;;  %p1952_p12 = scmp.lt.s32.totalorder %s1946_s7, %s1946_s7 }
  0x1c   :  { %p1953_p13 = por %p1952_p12, %p1951_p11 }
  0x1e   :  { %p1954_p0 = pnand %p1953_p13, %p1947_p10 }
  0x20   :  { %1957 = shalt.err (!%p1954_p0)
}
  0x21   :  { %49 = dma.hbm_to_vmem [thread:$0]  %s2286_s2, 256, %s44_s6, [#allocation6], %s1986_s23, %s1986_s23, %s1987_s24  }
  0x22   :  { %1978 = dma.done.wait [#allocation3], 256  }
  0x23   :  { %1979 = vsyncadd [#allocation3], 4294967040 }
  0x24   :  { %1980 = dma.done.wait [#allocation6], 512  }
  0x25   :  { %1981 = vsyncadd [#allocation6], 4294966784  ;;  %vm70_vm0 = vcmask 130048   ;;  %v69_v0 = vld [vmem:[#allocation5 + $0x8] sm:$0xff]  ;;  %v68_v1 = vld [vmem:[#allocation5] sm:$0xff]  ;;  %v1989_v4 = vmov 0.0   ;;  %v61_v25 = vlaneseq }
  0x26   :  { %v66_v2 = vld [vmem:[#allocation2] sm:$0xff]  ;;  %1751 = vmatprep.subr.mxu0 %v69_v0  ;;  %v67_v3 = vld [vmem:[#allocation2 + $0x8] sm:$0x3f]  ;;  %1758 = vmatprep.subr.mxu1 %v1989_v4  ;;  %vm1990_vm1 = vmmov 0   ;;  %s1991_s0 = smov 124   ;;  %s1992_s2 = smov 112  }
  0x27   :  { %1755 = vmatprep.mubr.msk.f32.mxu0 %vm70_vm0, %v66_v2  ;;  %1752 = vmatpush3.msra.mxu0 %v69_v0  ;;  %s1993_s9 = smov 104   ;;  %s1994_s10 = smov 108   ;;  %vm852_vm2 = vcmask 1040384   ;;  %vm155_vm3 = vcmask 31744   ;;  %vm251_vm4 = vcmask 1046528   ;;  %v62_v26 = vshrl.u32 %v61_v25, 7 }
  0x28   :  { %1753 = vmatprep.subr.mxu0 %v68_v1  ;;  %1760 = vmatprep.mubr.msk.f32.mxu1 %vm1990_vm1, %v1989_v4  ;;  %s1995_s11 = smov 100   ;;  %s1996_s12 = smov 120   ;;  %v64_v27 = vand.u32 127, %v61_v25  ;;  %vm232_vm6 = vcmask 55296   ;;  %vm247_vm7 = vcmask 56320   ;;  %vm847_vm8 = vcmask 64512  }
  0x29   :  { %1754 = vmatpush3.msra.mxu0 %v68_v1  ;;  %s1997_s13 = smov 116   ;;  %s1998_s14 = smov 96   ;;  %vm849_vm9 = vcmask 97280   ;;  %vm1643_vm10 = vcmask 128000  }
  0x2a   :  { %1756 = vmatmul.mubr.msk.f32.vlgmr.msra.gmra.mxu0 %vm70_vm0, %v67_v3  ;;  %1763 = vmatprep.subr.mxu0 %v1989_v4  ;;  %s1999_s15 = smov 92   ;;  %vm2125_vm5 = vcmp.le.s32.totalorder %v64_v27, %v62_v26  ;;  %s2000_s16 = smov 84  }
  0x2b   :  { %1765 = vmatprep.mubr.msk.f32.mxu0 %vm1990_vm1, %v1989_v4  ;;  %s2001_s17 = smov 88  }
  0xea   :  { %v1757_v5 = vpop.f32.mrf.mxu0 }
  0xeb   :  { %v854_v8 = vrot.slane %v1757_v5, 7 }
  0xec   :  { %v2061_v6 = vpop.f32.mrf.mxu0 }
  0xed   :  { %324 = vrot.lane.b32.xlu1 %v2061_v6, %s1991_s0  ;;  %153 = vrot.lane.b32.xlu0 %v2061_v6, %s1992_s2  ;;  %v853_v7 = vrot.slane %v2061_v6, 7 }
  0xef   :  { %v2070_v9 = vsel %vm852_vm2, %v853_v7, %v854_v8 }
  0xf1   :  { %496 = vrot.lane.b32.xlu1 %v2061_v6, %s1993_s9  ;;  %326 = vrot.lane.b32.xlu0 %v2061_v6, %s1994_s10 }
  0xf5   :  { %666 = vrot.lane.b32.xlu1 %v2061_v6, %s1995_s11  ;;  %494 = vrot.lane.b32.xlu0 %v2061_v6, %s1996_s12 }
  0xf9   :  { %664 = vrot.lane.b32.xlu0 %v2061_v6, %s1997_s13  ;;  %856 = vrot.lane.b32.xlu1 %v2070_v9, %s1992_s2  ;;  %s2002_s2 = smov 4  }
  0xfd   :  { %1026 = vrot.lane.b32.xlu0 %v2070_v9, %s1994_s10  ;;  %1024 = vrot.lane.b32.xlu1 %v2070_v9, %s1991_s0 }
 0x101   :  { %1196 = vrot.lane.b32.xlu0 %v2070_v9, %s1993_s9  ;;  %1194 = vrot.lane.b32.xlu1 %v2070_v9, %s1996_s12 }
 0x105   :  { %1366 = vrot.lane.b32.xlu0 %v2070_v9, %s1995_s11  ;;  %1364 = vrot.lane.b32.xlu1 %v2070_v9, %s1997_s13  ;;  %s2004_s11 = smov [#allocation8]  }
 0x106   :  { %s1650_s12 = sshll.u32 %s2004_s11, 4  ;;  %s1651_s12 = int_to_ptr.vmem [resolvable:$true] %s1650_s12 }
 0x107   :  { %s1958_s13 = scalar_lea.vmem %s1651_s12, 256  ;;  %p1963_p2 = scmp.lt.s32.totalorder %s1651_s12, %s1651_s12 }
 0x108   :  { %p1959_p1 = scmp.ne.s32.totalorder %s1651_s12, %s1958_s13  ;;  %p1964_p3 = scmp.lt.s32.totalorder %s1958_s13, %s1958_s13 }
 0x109   :  { %245 = vrot.lane.b32.xlu0 %v2061_v6, %s1998_s14  ;;  %417 = vrot.lane.b32.xlu1 %v2061_v6, %s1999_s15 }
 0x10a   :  { %p1965_p4 = por %p1964_p3, %p1963_p2 }
 0x10c   :  { %p1966_p5 = pnand %p1965_p4, %p1959_p1 }
 0x15f   :  { %v325_v10 = vpop.permute.xlu1 %324  ;;  %v154_v11 = vpop.permute.xlu0 %153 }
 0x160   :  { %1759 = vmatpush3.xpose.msk.msra.mxu1 %vm155_vm3, %v154_v11 }
 0x161   :  { %1768 = vmatprep.subr.mxu1 %v1989_v4 }
 0x163   :  { %v497_v12 = vpop.permute.xlu1 %496  ;;  %1761 = vmatmul.mubr.msk.f32.vlgmr.msra.gmra.mxu1 %vm155_vm3, %v2061_v6  ;;  %v327_v13 = vpop.permute.xlu0 %326 }
 0x164   :  { %1769 = vmatpush3.xpose.msk.msra.mxu1 %vm155_vm3, %v327_v13  ;;  %1770 = vmatprep.mubr.msk.f32.mxu1 %vm1990_vm1, %v1989_v4 }
 0x165   :  { %1778 = vmatprep.subr.mxu1 %v1989_v4 }
 0x167   :  { %v667_v14 = vpop.permute.xlu1 %666  ;;  %1771 = vmatmul.mubr.msk.f32.vlgmr.msra.gmra.mxu1 %vm155_vm3, %v325_v10  ;;  %v495_v15 = vpop.permute.xlu0 %494 }
 0x168   :  { %1779 = vmatpush3.xpose.msk.msra.mxu1 %vm155_vm3, %v497_v12  ;;  %1780 = vmatprep.mubr.msk.f32.mxu1 %vm1990_vm1, %v1989_v4 }
 0x169   :  { %1788 = vmatprep.subr.mxu1 %v1989_v4 }
 0x16b   :  { %1781 = vmatmul.mubr.msk.f32.vlgmr.msra.gmra.mxu1 %vm155_vm3, %v495_v15  ;;  %v665_v16 = vpop.permute.xlu0 %664  ;;  %v857_v17 = vpop.permute.xlu1 %856 }
 0x16c   :  { %1789 = vmatpush3.xpose.msk.msra.mxu1 %vm155_vm3, %v667_v14  ;;  %1790 = vmatprep.mubr.msk.f32.mxu1 %vm1990_vm1, %v1989_v4 }
 0x16d   :  { %1798 = vmatprep.subr.mxu1 %v1989_v4 }
 0x16f   :  { %1791 = vmatmul.mubr.msk.f32.vlgmr.msra.gmra.mxu1 %vm155_vm3, %v665_v16  ;;  %v1027_v18 = vpop.permute.xlu0 %1026  ;;  %v1025_v19 = vpop.permute.xlu1 %1024 }
 0x170   :  { %1799 = vmatpush3.xpose.msk.msra.mxu1 %vm155_vm3, %v857_v17  ;;  %1800 = vmatprep.mubr.msk.f32.mxu1 %vm1990_vm1, %v1989_v4 }
 0x171   :  { %1808 = vmatprep.subr.mxu1 %v1989_v4 }
 0x173   :  { %v1197_v20 = vpop.permute.xlu0 %1196  ;;  %1801 = vmatmul.mubr.msk.f32.vlgmr.msra.gmra.mxu1 %vm155_vm3, %v2070_v9  ;;  %v1195_v22 = vpop.permute.xlu1 %1194 }
 0x174   :  { %1809 = vmatpush3.xpose.msk.msra.mxu1 %vm155_vm3, %v1027_v18  ;;  %1810 = vmatprep.mubr.msk.f32.mxu1 %vm1990_vm1, %v1989_v4 }
 0x175   :  { %1818 = vmatprep.subr.mxu1 %v1989_v4 }
 0x177   :  { %v1367_v21 = vpop.permute.xlu0 %1366  ;;  %1811 = vmatmul.mubr.msk.f32.vlgmr.msra.gmra.mxu1 %vm155_vm3, %v1025_v19  ;;  %v1365_v24 = vpop.permute.xlu1 %1364 }
 0x178   :  { %1819 = vmatpush3.xpose.msk.msra.mxu1 %vm155_vm3, %v1197_v20  ;;  %1820 = vmatprep.mubr.msk.f32.mxu1 %vm1990_vm1, %v1989_v4 }
 0x179   :  { %1828 = vmatprep.subr.mxu1 %v1989_v4 }
 0x17b   :  { %v246_v23 = vpop.permute.xlu0 %245  ;;  %1821 = vmatmul.mubr.msk.f32.vlgmr.msra.gmra.mxu1 %vm155_vm3, %v1195_v22  ;;  %v2157_v7 = vpop.permute.xlu1 %417 }
 0x17c   :  { %1764 = vmatpush3.msk.msra.mxu0 %vm251_vm4, %v246_v23  ;;  %1829 = vmatpush3.xpose.msk.msra.mxu1 %vm155_vm3, %v1367_v21 }
 0x17d   :  { %1830 = vmatprep.mubr.msk.f32.mxu1 %vm1990_vm1, %v1989_v4  ;;  %1773 = vmatprep.subr.mxu0 %v1989_v4 }
 0x17f   :  { %1831 = vmatmul.mubr.msk.f32.vlgmr.msra.gmra.mxu1 %vm155_vm3, %v1365_v24 }
 0x223   :  { %v226_v28 = vpop.f32.mrf.mxu1 }
 0x224   :  { %v230_v30 = vmul.f32 0.5, %v226_v28 }
 0x225   :  { %v1762_v31 = vpop.f32.mrf.mxu1 }
 0x226   :  { %v231_v32 = vsel %vm2125_vm5, %v230_v30, -1e+30 }
 0x227   :  { %v398_v33 = vpop.f32.mrf.mxu1  ;;  %v233_v34 = vsel %vm232_vm6, %v231_v32, -inf }
 0x228   :  { %v402_v35 = vmul.f32 0.5, %v398_v33  ;;  %234 = vmax.xlane.f32.xlu0 %v233_v34 }
 0x229   :  { %v1772_v36 = vpop.f32.mrf.mxu1 }
 0x22a   :  { %v403_v37 = vsel %vm2125_vm5, %v402_v35, -1e+30 }
 0x22b   :  { %v568_v38 = vpop.f32.mrf.mxu1  ;;  %v404_v39 = vsel %vm232_vm6, %v403_v37, -inf }
 0x22c   :  { %v572_v40 = vmul.f32 0.5, %v568_v38  ;;  %405 = vmax.xlane.f32.xlu1 %v404_v39 }
 0x22d   :  { %v1782_v41 = vpop.f32.mrf.mxu1 }
 0x22e   :  { %v573_v42 = vsel %vm2125_vm5, %v572_v40, -1e+30 }
 0x22f   :  { %v738_v43 = vpop.f32.mrf.mxu1  ;;  %v574_v44 = vsel %vm232_vm6, %v573_v42, -inf }
 0x230   :  { %v742_v45 = vmul.f32 0.5, %v738_v43  ;;  %575 = vmax.xlane.f32.xlu0 %v574_v44 }
 0x231   :  { %v1792_v46 = vpop.f32.mrf.mxu1 }
 0x232   :  { %v743_v47 = vsel %vm2125_vm5, %v742_v45, -1e+30 }
 0x233   :  { %v928_v48 = vpop.f32.mrf.mxu1  ;;  %v744_v49 = vsel %vm232_vm6, %v743_v47, -inf }
 0x234   :  { %v932_v50 = vmul.f32 0.5, %v928_v48  ;;  %745 = vmax.xlane.f32.xlu0 %v744_v49 }
 0x235   :  { %v1802_v51 = vpop.f32.mrf.mxu1 }
 0x236   :  { %v933_v52 = vsel %vm2125_vm5, %v932_v50, -1e+30 }
 0x237   :  { %v1098_v53 = vpop.f32.mrf.mxu1  ;;  %v934_v54 = vsel %vm232_vm6, %v933_v52, -inf }
 0x238   :  { %v1102_v55 = vmul.f32 0.5, %v1098_v53  ;;  %935 = vmax.xlane.f32.xlu1 %v934_v54 }
 0x239   :  { %v1812_v56 = vpop.f32.mrf.mxu1 }
 0x23a   :  { %v1103_v57 = vsel %vm2125_vm5, %v1102_v55, -1e+30 }
 0x23b   :  { %v1268_v58 = vpop.f32.mrf.mxu1  ;;  %v1104_v59 = vsel %vm232_vm6, %v1103_v57, -inf }
 0x23c   :  { %v1272_v60 = vmul.f32 0.5, %v1268_v58  ;;  %1105 = vmax.xlane.f32.xlu0 %v1104_v59 }
 0x23d   :  { %v1822_v61 = vpop.f32.mrf.mxu1 }
 0x23e   :  { %v1273_v62 = vsel %vm2125_vm5, %v1272_v60, -1e+30 }
 0x23f   :  { %v1438_v63 = vpop.f32.mrf.mxu1  ;;  %v1274_v0 = vsel %vm232_vm6, %v1273_v62, -inf }
 0x240   :  { %v1442_v1 = vmul.f32 0.5, %v1438_v63  ;;  %1275 = vmax.xlane.f32.xlu1 %v1274_v0 }
 0x241   :  { %v1832_v2 = vpop.f32.mrf.mxu1 }
 0x242   :  { %v1443_v3 = vsel %vm2125_vm5, %v1442_v1, -1e+30 }
 0x243   :  { %v1444_v5 = vsel %vm232_vm6, %v1443_v3, -inf }
 0x244   :  { %1445 = vmax.xlane.f32.xlu0 %v1444_v5 }
 0x251   :  { %757 = vrot.lane.b32.xlu1 %v2061_v6, %s2000_s16 }
 0x25a   :  { %587 = vrot.lane.b32.xlu0 %v2061_v6, %s2001_s17 }
 0x2b1   :  { %v235_v8 = vpop.xlane.xlu0 %234 }
 0x2b2   :  { %v236_v10 = vsub.f32 %v231_v32, %v235_v8 }
 0x2b4   :  { %v237_v11 = vmul.f32 1.442695, %v236_v10 }
 0x2b5   :  { %v406_v12 = vpop.xlane.xlu1 %405 }
 0x2b6   :  { %1866 = vpow2.f32 %v237_v11  ;;  %v407_v13 = vsub.f32 %v403_v37, %v406_v12 }
 0x2b8   :  { %v408_v14 = vmul.f32 1.442695, %v407_v13 }
 0x2b9   :  { %v576_v15 = vpop.xlane.xlu0 %575 }
 0x2ba   :  { %1868 = vpow2.f32 %v408_v14  ;;  %v577_v16 = vsub.f32 %v573_v42, %v576_v15 }
 0x2bc   :  { %v578_v17 = vmul.f32 1.442695, %v577_v16 }
 0x2bd   :  { %v746_v18 = vpop.xlane.xlu0 %745 }
 0x2be   :  { %1870 = vpow2.f32 %v578_v17  ;;  %v747_v19 = vsub.f32 %v743_v47, %v746_v18 }
 0x2c0   :  { %v748_v20 = vmul.f32 1.442695, %v747_v19 }
 0x2c1   :  { %v936_v28 = vpop.xlane.xlu1 %935 }
 0x2c2   :  { %1872 = vpow2.f32 %v748_v20  ;;  %v937_v29 = vsub.f32 %v933_v52, %v936_v28 }
 0x2c3   :  { %v1867_v21 = vpop.eup %1866 }
 0x2c4   :  { %v239_v6 = vsel %vm232_vm6, %v1867_v21, 0.0  ;;  %v938_v33 = vmul.f32 1.442695, %v937_v29 }
 0x2c5   :  { %240 = vadd.xlane.f32.xlu1 %v239_v6  ;;  %v1106_v30 = vpop.xlane.xlu0 %1105 }
 0x2c6   :  { %v1107_v32 = vsub.f32 %v1103_v57, %v1106_v30  ;;  %1874 = vpow2.f32 %v938_v33 }
 0x2c7   :  { %v1869_v22 = vpop.eup %1868 }
 0x2c8   :  { %v410_v23 = vsel %vm232_vm6, %v1869_v22, 0.0  ;;  %v1108_v36 = vmul.f32 1.442695, %v1107_v32 }
 0x2c9   :  { %411 = vadd.xlane.f32.xlu0 %v410_v23  ;;  %v1276_v31 = vpop.xlane.xlu1 %1275 }
 0x2ca   :  { %v1277_v34 = vsub.f32 %v1273_v62, %v1276_v31  ;;  %1876 = vpow2.f32 %v1108_v36 }
 0x2cb   :  { %v2161_v24 = vpop.eup %1870 }
 0x2cc   :  { %v580_v25 = vsel %vm232_vm6, %v2161_v24, 0.0  ;;  %v1278_v37 = vmul.f32 1.442695, %v1277_v34 }
 0x2cd   :  { %581 = vadd.xlane.f32.xlu1 %v580_v25  ;;  %v1446_v35 = vpop.xlane.xlu0 %1445  ;;  %v758_v48 = vpop.permute.xlu1 %757 }
 0x2ce   :  { %v1447_v38 = vsub.f32 %v1443_v3, %v1446_v35  ;;  %1878 = vpow2.f32 %v1278_v37 }
 0x2cf   :  { %v2165_v26 = vpop.eup %1872 }
 0x2d0   :  { %v750_v27 = vsel %vm232_vm6, %v2165_v26, 0.0  ;;  %v1448_v39 = vmul.f32 1.442695, %v1447_v38 }
 0x2d1   :  { %751 = vadd.xlane.f32.xlu0 %v750_v27  ;;  %v588_v49 = vpop.permute.xlu0 %587  ;;  %v1553_v27 = vld [vmem:[#allocation7] sm:$0xff] }
 0x2d2   :  { %1880 = vpow2.f32 %v1448_v39 }
 0x2d3   :  { %v2173_v40 = vpop.eup %1874 }
 0x2d4   :  { %v940_v42 = vsel %vm232_vm6, %v2173_v40, 0.0 }
 0x2d7   :  { %v2175_v41 = vpop.eup %1876 }
 0x2d8   :  { %v1110_v44 = vsel %vm232_vm6, %v2175_v41, 0.0 }
 0x2db   :  { %v2179_v43 = vpop.eup %1878 }
 0x2dc   :  { %v1280_v45 = vsel %vm232_vm6, %v2179_v43, 0.0 }
 0x2de   :  { %1117 = vrot.lane.b32.xlu1 %v2070_v9, %s1999_s15 }
 0x2df   :  { %v2185_v46 = vpop.eup %1880 }
 0x2e0   :  { %v1450_v47 = vsel %vm232_vm6, %v2185_v46, 0.0 }
 0x2e7   :  { %947 = vrot.lane.b32.xlu0 %v2070_v9, %s1998_s14 }
 0x302   :  { %941 = vadd.xlane.f32.xlu1 %v940_v42 }
 0x306   :  { %1111 = vadd.xlane.f32.xlu0 %v1110_v44  ;;  %1281 = vadd.xlane.f32.xlu1 %v1280_v45 }
 0x30a   :  { %1451 = vadd.xlane.f32.xlu1 %v1450_v47 }
 0x31b   :  { %1457 = vrot.lane.b32.xlu1 %v2070_v9, %s2000_s16 }
 0x31c   :  { %1287 = vrot.lane.b32.xlu0 %v2070_v9, %s2001_s17 }
 0x34e   :  { %v241_v50 = vpop.xlane.xlu1 %240 }
 0x34f   :  { %1882 = vrcp.f32 %v241_v50 }
 0x352   :  { %v412_v51 = vpop.xlane.xlu0 %411 }
 0x353   :  { %1884 = vrcp.f32 %v412_v51 }
 0x356   :  { %v582_v52 = vpop.xlane.xlu1 %581 }
 0x357   :  { %1886 = vrcp.f32 %v582_v52 }
 0x35a   :  { %v752_v53 = vpop.xlane.xlu0 %751  ;;  %v1118_v62 = vpop.permute.xlu1 %1117 }
 0x35b   :  { %1888 = vrcp.f32 %v752_v53 }
 0x35c   :  { %v1883_v54 = vpop.eup %1882 }
 0x35d   :  { %v243_v55 = vmul.f32 %v1883_v54, %v1867_v21 }
 0x35e   :  { %v948_v61 = vpop.permute.xlu0 %947 }
 0x35f   :  { %244 = vst.msk [vmem:[%s2289_s5] sm:$0x7f] %vm232_vm6, %v243_v55  ;;  %1766 = vmatmul.mubr.msk.f32.vlgmr.msra.gmra.mxu0 %vm247_vm7, %v243_v55 }
 0x360   :  { %v1885_v9 = vpop.eup %1884  ;;  %1774 = vmatpush3.msk.msra.mxu0 %vm251_vm4, %v2157_v7  ;;  %1775 = vmatprep.mubr.msk.f32.mxu0 %vm1990_vm1, %v1989_v4 }
 0x361   :  { %1783 = vmatprep.subr.mxu0 %v1989_v4  ;;  %v414_v56 = vmul.f32 %v1885_v9, %v1869_v22 }
 0x363   :  { %1675 = vst.msk [vmem:[%s2289_s5 + $0x8] sm:$0x7f] %vm232_vm6, %v414_v56  ;;  %1776 = vmatmul.mubr.msk.f32.vlgmr.msra.gmra.mxu0 %vm247_vm7, %v414_v56 }
 0x364   :  { %v1887_v57 = vpop.eup %1886  ;;  %1784 = vmatpush3.msk.msra.mxu0 %vm251_vm4, %v588_v49  ;;  %1785 = vmatprep.mubr.msk.f32.mxu0 %vm1990_vm1, %v1989_v4 }
 0x365   :  { %1793 = vmatprep.subr.mxu0 %v1989_v4  ;;  %v584_v58 = vmul.f32 %v1887_v57, %v2161_v24  ;;  %v1554_v24 = vld [vmem:[#allocation7 + $0x8] sm:$0xff] }
 0x366   :  { %1838 = vmatprep.subr.mxu1 %v1554_v24 }
 0x367   :  { %1680 = vst.msk [vmem:[%s2289_s5 + $0x10] sm:$0x7f] %vm232_vm6, %v584_v58  ;;  %1786 = vmatmul.mubr.msk.f32.vlgmr.msra.gmra.mxu0 %vm247_vm7, %v584_v58  ;;  %1839 = vmatpush3.msra.mxu1 %v1554_v24 }
 0x368   :  { %v1889_v59 = vpop.eup %1888  ;;  %1794 = vmatpush3.msk.msra.mxu0 %vm251_vm4, %v758_v48  ;;  %1795 = vmatprep.mubr.msk.f32.mxu0 %vm1990_vm1, %v1989_v4 }
 0x369   :  { %1803 = vmatprep.subr.mxu0 %v1989_v4  ;;  %v754_v60 = vmul.f32 %v1889_v59, %v2165_v26  ;;  %1840 = vmatprep.subr.mxu1 %v1553_v27 }
 0x36a   :  { %1841 = vmatpush3.msra.mxu1 %v1553_v27 }
 0x36b   :  { %1685 = vst.msk [vmem:[%s2289_s5 + $0x18] sm:$0x7f] %vm232_vm6, %v754_v60  ;;  %1796 = vmatmul.mubr.msk.f32.vlgmr.msra.gmra.mxu0 %vm247_vm7, %v754_v60 }
 0x36c   :  { %1804 = vmatpush3.msk.msra.mxu0 %vm251_vm4, %v948_v61  ;;  %1805 = vmatprep.mubr.msk.f32.mxu0 %vm1990_vm1, %v1989_v4 }
 0x36d   :  { %1813 = vmatprep.subr.mxu0 %v1989_v4 }
 0x38b   :  { %v942_v63 = vpop.xlane.xlu1 %941 }
 0x38c   :  { %1890 = vrcp.f32 %v942_v63 }
 0x38f   :  { %v1112_v0 = vpop.xlane.xlu0 %1111  ;;  %v1282_v1 = vpop.xlane.xlu1 %1281 }
 0x390   :  { %1892 = vrcp.f32 %v1112_v0 }
 0x391   :  { %1894 = vrcp.f32 %v1282_v1 }
 0x393   :  { %v1452_v2 = vpop.xlane.xlu1 %1451  ;;  %v1288_v12 = vpop.permute.xlu0 %1287 }
 0x394   :  { %1896 = vrcp.f32 %v1452_v2 }
 0x397   :  { %v1458_v15 = vpop.permute.xlu1 %1457 }
 0x399   :  { %v1891_v3 = vpop.eup %1890 }
 0x39a   :  { %v944_v5 = vmul.f32 %v1891_v3, %v2173_v40 }
 0x39c   :  { %1690 = vst.msk [vmem:[%s2289_s5 + $0x20] sm:$0x7f] %vm232_vm6, %v944_v5  ;;  %1806 = vmatmul.mubr.msk.f32.vlgmr.msra.gmra.mxu0 %vm247_vm7, %v944_v5 }
 0x39d   :  { %v1893_v7 = vpop.eup %1892  ;;  %1814 = vmatpush3.msk.msra.mxu0 %vm251_vm4, %v1118_v62  ;;  %1815 = vmatprep.mubr.msk.f32.mxu0 %vm1990_vm1, %v1989_v4 }
 0x39e   :  { %v1895_v8 = vpop.eup %1894  ;;  %1823 = vmatprep.subr.mxu0 %v1989_v4  ;;  %v1114_v10 = vmul.f32 %v1893_v7, %v2175_v41 }
 0x39f   :  { %v1284_v11 = vmul.f32 %v1895_v8, %v2179_v43 }
 0x3a0   :  { %1695 = vst.msk [vmem:[%s2289_s5 + $0x28] sm:$0x7f] %vm232_vm6, %v1114_v10  ;;  %1816 = vmatmul.mubr.msk.f32.vlgmr.msra.gmra.mxu0 %vm247_vm7, %v1114_v10 }
 0x3a1   :  { %v1897_v13 = vpop.eup %1896  ;;  %1824 = vmatpush3.msk.msra.mxu0 %vm251_vm4, %v1288_v12  ;;  %1825 = vmatprep.mubr.msk.f32.mxu0 %vm1990_vm1, %v1989_v4  ;;  %1700 = vst.msk [vmem:[%s2289_s5 + $0x30] sm:$0x7f] %vm232_vm6, %v1284_v11 }
 0x3a2   :  { %1833 = vmatprep.subr.mxu0 %v1989_v4  ;;  %v1454_v14 = vmul.f32 %v1897_v13, %v2185_v46  ;;  %v1708_v46 = vld [vmem:[%s2287_s3] ss:$0 sm:$0xff] }
 0x3a4   :  { %1826 = vmatmul.mubr.msk.f32.vlgmr.msra.gmra.mxu0 %vm247_vm7, %v1284_v11  ;;  %1705 = vst.msk [vmem:[%s2289_s5 + $0x38] sm:$0x7f] %vm232_vm6, %v1454_v14  ;;  %s2003_s5 = smov 12  }
 0x3a5   :  { %1834 = vmatpush3.msk.msra.mxu0 %vm251_vm4, %v1458_v15  ;;  %1835 = vmatprep.mubr.msk.f32.mxu0 %vm1990_vm1, %v1989_v4 }
 0x3a8   :  { %1836 = vmatmul.mubr.msk.f32.vlgmr.msra.gmra.mxu0 %vm247_vm7, %v1454_v14 }
 0x41f   :  { %v320_v16 = vpop.f32.mrf.mxu0 }
 0x421   :  { %v1767_v17 = vpop.f32.mrf.mxu0 }
 0x423   :  { %v490_v18 = vpop.f32.mrf.mxu0 }
 0x424   :  { %835 = vrot.lane.b32.xlu0 %v490_v18, %s2002_s2 }
 0x425   :  { %v1777_v19 = vpop.f32.mrf.mxu0 }
 0x427   :  { %v660_v20 = vpop.f32.mrf.mxu0 }
 0x429   :  { %v1787_v21 = vpop.f32.mrf.mxu0 }
 0x42b   :  { %v830_v6 = vpop.f32.mrf.mxu0 }
 0x42d   :  { %v1797_v22 = vpop.f32.mrf.mxu0 }
 0x45c   :  { %v1020_v23 = vpop.f32.mrf.mxu0 }
 0x45e   :  { %v1807_v25 = vpop.f32.mrf.mxu0 }
 0x460   :  { %v1190_v26 = vpop.f32.mrf.mxu0 }
 0x461   :  { %1535 = vrot.lane.b32.xlu0 %v1190_v26, %s2002_s2 }
 0x462   :  { %v1817_v4 = vpop.f32.mrf.mxu0 }
 0x464   :  { %v1360_v28 = vpop.f32.mrf.mxu0 }
 0x465   :  { %839 = vrot.lane.b32.xlu0 %v660_v20, %s1987_s24  ;;  %1539 = vrot.lane.b32.xlu1 %v1360_v28, %s1987_s24 }
 0x466   :  { %v1827_v29 = vpop.f32.mrf.mxu0 }
 0x468   :  { %v1530_v30 = vpop.f32.mrf.mxu0 }
 0x469   :  { %1543 = vrot.lane.b32.xlu1 %v1530_v30, %s2003_s5 }
 0x46a   :  { %v1837_v31 = vpop.f32.mrf.mxu0 }
 0x46d   :  { %843 = vrot.lane.b32.xlu1 %v830_v6, %s2003_s5 }
 0x496   :  { %v836_v32 = vpop.permute.xlu0 %835 }
 0x497   :  { %v846_v40 = vsel %vm155_vm3, %v320_v16, %v836_v32 }
 0x4d3   :  { %v1536_v33 = vpop.permute.xlu0 %1535 }
 0x4d4   :  { %v1546_v35 = vsel %vm155_vm3, %v1020_v23, %v1536_v33 }
 0x4d7   :  { %v1540_v34 = vpop.permute.xlu1 %1539  ;;  %v840_v38 = vpop.permute.xlu0 %839 }
 0x4d8   :  { %v1547_v36 = vsel %vm847_vm8, %v1546_v35, %v1540_v34  ;;  %v848_v41 = vsel %vm847_vm8, %v846_v40, %v840_v38 }
 0x4db   :  { %v1544_v37 = vpop.permute.xlu1 %1543 }
 0x4dc   :  { %v1548_v39 = vsel %vm849_vm9, %v1547_v36, %v1544_v37 }
 0x4dd   :  { %v1550_v42 = vrot.slane %v1548_v39, 1 }
 0x4df   :  { %v844_v43 = vpop.permute.xlu1 %843 }
 0x4e0   :  { %v850_v44 = vsel %vm849_vm9, %v848_v41, %v844_v43 }
 0x4e1   :  { %v1552_v45 = vsel %vm251_vm4, %v850_v44, %v1550_v42 }
 0x4e2   :  { %1842 = vmatprep.mubr.msk.f32.mxu1 %vm70_vm0, %v1552_v45 }
 0x4e3   :  { %1843 = vmatmul.mubr.msk.f32.vlgmr.msra.gmra.mxu1 %vm70_vm0, %v1550_v42 }
 0x5a3   :  { %v1844_v47 = vpop.f32.mrf.mxu1 }
 0x5a4   :  { %v1639_v48 = vadd.f32 %v1844_v47, %v1708_v46 }
 0x5a5   :  { %v1633_v49 = vpop.f32.mrf.mxu1 }
 0x5a6   :  { %v1634_v50 = vadd.f32 %v1708_v46, %v1633_v49  ;;  %1644 = vst.msk [vmem:[#allocation8 + $0x8] sm:$0x3f] %vm1643_vm10, %v1639_v48 }
 0x5a8   :  { %1642 = vst.msk [vmem:[#allocation8] sm:$0xff] %vm70_vm0, %v1634_v50 }
 0x5a9   :  { %1969 = shalt.err (!%p1966_p5)
}
 0x5aa   :  { %1656 = dma.vmem_to_hbm [thread:$0]  %s1651_s12, 256, %s2288_s4, [#allocation4], %s1986_s23, %s1986_s23, %s1987_s24  }
 0x5ab   :  { %1982 = dma.done.wait [#allocation4], 256  }
 0x5ac   :  { %1983 = vsyncadd [#allocation4], 4294967040 }
 0x5ad   :  { %1664 = vsyncpa [#allocation3], 1 }
 0x5ae   :  { %1665 = vsyncpa [#allocation6], 1 }
 0x5af   :  { %1666 = vsyncpa [#allocation4], 1 }

</bundles_post_ra>
